<compile_context>
chip_gen: v5e
topology: v5e:2x2
jax: 0.10.0
libtpu: 0.0.40
codegen_flags: <defaults>
</compile_context>

<pallas_src>
import functools

import jax
import jax.numpy as jnp
from jax.experimental import pallas as pl
from jax.experimental.pallas import tpu as pltpu


def _round_up(x, m):
    return ((x + m - 1) // m) * m


# ---------------------------------------------------------------------------
# Kernel: multi-layer tanh RNN over a whole sequence + Linear + LogSoftmax.
# ---------------------------------------------------------------------------
def _rnn_seq_kernel(n_layers, seq_len, *refs):
    """refs = [x (T,Bp,IN_PAD), h0 (L,Bp,H_PAD),
               (w_l (K_l,H_PAD), b_l (1,H_PAD)) * L,
               w_fc (H_PAD,O_PAD), b_fc (1,O_PAD),
               out (T,Bp,O_PAD), h_out (L,Bp,H_PAD)]   (last two are outputs)."""
    x_ref, h0_ref = refs[0], refs[1]
    w_refs = refs[2:2 + 2 * n_layers]
    wfc_ref = refs[2 + 2 * n_layers]
    bfc_ref = refs[3 + 2 * n_layers]
    out_ref, hout_ref = refs[-2], refs[-1]

    # Load all weights once; they stay live in vregs/VMEM for the whole sequence.
    ws = [w_refs[2 * l][...] for l in range(n_layers)]          # (K_l, H_PAD)
    bs = [w_refs[2 * l + 1][...] for l in range(n_layers)]      # (1, H_PAD)
    wfc = wfc_ref[...]                                          # (H_PAD, O_PAD)
    bfc = bfc_ref[...]                                          # (1, O_PAD)

    # Hidden state carried in registers across time steps.
    h = [h0_ref[l] for l in range(n_layers)]                    # each (Bp, H_PAD)

    for t in range(seq_len):                                    # static unrolled
        layer_in = x_ref[t]                                     # (Bp, IN_PAD)
        for l in range(n_layers):
            # Fused [x, h] @ [W_ih; W_hh] + (b_ih + b_hh): one MXU matmul/layer.
            # Both operands are 128-lane padded -> the concat offset is vreg-aligned.
            xh = jnp.concatenate([layer_in, h[l]], axis=1)      # (Bp, K_l)
            pre = jnp.dot(xh, ws[l],
                          preferred_element_type=jnp.float32) + bs[l]
            h[l] = jnp.tanh(pre)                                # (Bp, H_PAD)
            layer_in = h[l]

        # fc: (Bp, H_PAD) @ (H_PAD, O_PAD) + b  (padded logit lanes get -1e30 bias)
        logits = jnp.dot(layer_in, wfc,
                         preferred_element_type=jnp.float32) + bfc

        # Dropout(p=0.1) is the identity in eval/inference mode.
        # TODO(synk): training-mode dropout (stochastic mask via pltpu.prng_*) not emitted.

        # LogSoftmax over the lane axis (numerically stable; padded lanes vanish).
        m = jnp.max(logits, axis=1, keepdims=True)
        shifted = logits - m
        lse = jnp.log(jnp.sum(jnp.exp(shifted), axis=1, keepdims=True))
        out_ref[t] = shifted - lse                              # full-tile store

    for l in range(n_layers):
        hout_ref[l] = h[l]                                      # full-tile stores


# ---------------------------------------------------------------------------
# Wrapper: padding, pallas_call, un-padding.
# ---------------------------------------------------------------------------
def _run(x_seq, hidden, prep, n_layers, n_hidden, output_size):
    """x_seq: (T, B, in_dim) = cat(category, input); hidden: (L, B, H)."""
    T, B, in_dim = x_seq.shape
    Bp = _round_up(B, 8)
    IN_PAD = _round_up(in_dim, 128)
    H_PAD = _round_up(n_hidden, 128)
    O_PAD = _round_up(output_size, 128)

    x_p = jnp.zeros((T, Bp, IN_PAD), jnp.float32)
    x_p = x_p.at[:, :B, :in_dim].set(x_seq.astype(jnp.float32))
    h_p = jnp.zeros((n_layers, Bp, H_PAD), jnp.float32)
    h_p = h_p.at[:, :B, :n_hidden].set(hidden.astype(jnp.float32))

    flat = [x_p, h_p]
    for l in range(n_layers):
        flat += [prep[f"w_{l}"], prep[f"b_{l}"]]
    flat += [prep["w_fc"], prep["b_fc"]]

    kernel = functools.partial(_rnn_seq_kernel, n_layers, T)
    out_p, h_out_p = pl.pallas_call(
        kernel,
        out_shape=(
            jax.ShapeDtypeStruct((T, Bp, O_PAD), jnp.float32),        # log-probs
            jax.ShapeDtypeStruct((n_layers, Bp, H_PAD), jnp.float32),  # new hidden
        ),
        in_specs=[pl.BlockSpec(memory_space=pltpu.MemorySpace.VMEM)
                  for _ in flat],
        out_specs=(pl.BlockSpec(memory_space=pltpu.MemorySpace.VMEM),
                   pl.BlockSpec(memory_space=pltpu.MemorySpace.VMEM)),
    )(*flat)

    out = out_p[:, :B, :output_size]            # (T, B, O)
    h_new = h_out_p[:, :B, :n_hidden]           # (L, B, H)
    return out, h_new


def rnn_forward(category, inp, hidden, prep, *, n_hidden, output_size):
    """Mirrors RNN.forward(category, input, hidden)  (seq_len == 1)."""
    n_layers = hidden.shape[0]
    x = jnp.concatenate([category, inp], axis=1)[None]     # (1, B, in_dim)
    out_seq, h_new = _run(x, hidden, prep, n_layers, n_hidden, output_size)
    return out_seq[0], h_new


def rnn_forward_seq(category_seq, input_seq, hidden, prep, *, n_hidden, output_size):
    """Whole sequence in one pallas_call (amortizes launch + weight DMA)."""
    n_layers = hidden.shape[0]
    x = jnp.concatenate([category_seq, input_seq], axis=2)  # (T, B, in_dim)
    return _run(x, hidden, prep, n_layers, n_hidden, output_size)


# ---------------------------------------------------------------------------
# Parameter init (PyTorch nn.RNN / nn.Linear convention) and kernel-layout prep.
# ---------------------------------------------------------------------------
def init_params(key, input_size, n_hidden, n_categories, output_size, n_layers):
    """uniform(-1/sqrt(H), 1/sqrt(H)), shapes as in nn.RNN / nn.Linear."""
    params = {}
    in_dim = input_size + n_categories
    k_rnn = 1.0 / jnp.sqrt(jnp.float32(n_hidden))
    for l in range(n_layers):
        layer_in = in_dim if l == 0 else n_hidden
        key, k1, k2, k3, k4 = jax.random.split(key, 5)
        params[f"w_ih_{l}"] = jax.random.uniform(
            k1, (n_hidden, layer_in), jnp.float32, -k_rnn, k_rnn)
        params[f"w_hh_{l}"] = jax.random.uniform(
            k2, (n_hidden, n_hidden), jnp.float32, -k_rnn, k_rnn)
        params[f"b_ih_{l}"] = jax.random.uniform(
            k3, (1, n_hidden), jnp.float32, -k_rnn, k_rnn)
        params[f"b_hh_{l}"] = jax.random.uniform(
            k4, (1, n_hidden), jnp.float32, -k_rnn, k_rnn)
    key, k5, k6 = jax.random.split(key, 3)
    k_fc = 1.0 / jnp.sqrt(jnp.float32(n_hidden))
    params["w_fc"] = jax.random.uniform(
        k5, (output_size, n_hidden), jnp.float32, -k_fc, k_fc)
    params["b_fc"] = jax.random.uniform(
        k6, (1, output_size), jnp.float32, -k_fc, k_fc)
    return params


def prepare_params(params, input_size, n_categories, n_hidden, output_size, n_layers):
    """One-time layout plumbing: pre-transpose, fuse ih/hh weights & biases,
    pad every feature dim to 128 lanes. Zero-padding is exact (padded rows/cols
    contribute 0); the fc bias pad is -1e30 so log-softmax ignores padded logits."""
    in_dim = input_size + n_categories
    IN_PAD = _round_up(in_dim, 128)
    H_PAD = _round_up(n_hidden, 128)
    O_PAD = _round_up(output_size, 128)

    prep = {}
    for l in range(n_layers):
        k_in = in_dim if l == 0 else n_hidden
        K_IN = IN_PAD if l == 0 else H_PAD
        w = jnp.zeros((K_IN + H_PAD, H_PAD), jnp.float32)
        w = w.at[:k_in, :n_hidden].set(params[f"w_ih_{l}"].T)
        w = w.at[K_IN:K_IN + n_hidden, :n_hidden].set(params[f"w_hh_{l}"].T)
        b = jnp.zeros((1, H_PAD), jnp.float32)
        b = b.at[:, :n_hidden].set(params[f"b_ih_{l}"] + params[f"b_hh_{l}"])
        prep[f"w_{l}"] = w
        prep[f"b_{l}"] = b

    w_fc = jnp.zeros((H_PAD, O_PAD), jnp.float32)
    w_fc = w_fc.at[:n_hidden, :output_size].set(params["w_fc"].T)
    b_fc = jnp.full((1, O_PAD), -1e30, jnp.float32)
    b_fc = b_fc.at[:, :output_size].set(params["b_fc"].reshape(1, -1))
    prep["w_fc"] = w_fc
    prep["b_fc"] = b_fc
    return prep


# ---------------------------------------------------------------------------
# Pure-JAX reference (PyTorch-convention params) for correctness checks.
# ---------------------------------------------------------------------------
def _ref_step(category, inp, hidden, params, n_layers):
    x = jnp.concatenate([category, inp], axis=1)
    new_h = []
    layer_in = x
    for l in range(n_layers):
        pre = (layer_in @ params[f"w_ih_{l}"].T + params[f"b_ih_{l}"]
               + hidden[l] @ params[f"w_hh_{l}"].T + params[f"b_hh_{l}"])
        hl = jnp.tanh(pre)
        new_h.append(hl)
        layer_in = hl
    logits = layer_in @ params["w_fc"].T + params["b_fc"]
    out = jax.nn.log_softmax(logits, axis=1)
    return out, jnp.stack(new_h, axis=0)


if __name__ == "__main__":
    input_size = 16
    n_categories = 8
    n_hidden = 32
    output_size = 10
    n_layers = 2
    batch = 2
    seq_len = 8

    key = jax.random.PRNGKey(0)
    key, kc, ki, ks = jax.random.split(key, 4)
    params = init_params(key, input_size, n_hidden, n_categories,
                         output_size, n_layers)
    prep = prepare_params(params, input_size, n_categories, n_hidden,
                          output_size, n_layers)

    category = jax.random.normal(kc, (batch, n_categories), jnp.float32)
    inp = jax.random.normal(ki, (batch, input_size), jnp.float32)
    hidden = jnp.zeros((n_layers, batch, n_hidden), jnp.float32)  # initHidden

    # --- single-step forward (matches RNN.forward semantics exactly) ---------
    out, new_hidden = rnn_forward(category, inp, hidden, prep,
                                  n_hidden=n_hidden, output_size=output_size)
    jax.block_until_ready((out, new_hidden))

    assert out.shape == (batch, output_size)
    assert new_hidden.shape == (n_layers, batch, n_hidden)
    assert jnp.allclose(jnp.sum(jnp.exp(out), axis=1), 1.0, atol=1e-4)

    ref_out, ref_h = _ref_step(category, inp, hidden, params, n_layers)
    assert jnp.allclose(out, ref_out, atol=1e-4, rtol=1e-4)
    assert jnp.allclose(new_hidden, ref_h, atol=1e-4, rtol=1e-4)

    # --- sequence mode: the whole time loop inside a single pallas_call ------
    cat_seq = jnp.broadcast_to(category, (seq_len, batch, n_categories))
    inp_seq = jax.random.normal(ks, (seq_len, batch, input_size), jnp.float32)
    out_seq, h_seq = rnn_forward_seq(cat_seq, inp_seq, hidden, prep,
                                     n_hidden=n_hidden, output_size=output_size)
    jax.block_until_ready((out_seq, h_seq))

    assert out_seq.shape == (seq_len, batch, output_size)
    assert h_seq.shape == (n_layers, batch, n_hidden)

    h_ref = hidden
    ref_outs = []
    for t in range(seq_len):
        o_t, h_ref = _ref_step(cat_seq[t], inp_seq[t], h_ref, params, n_layers)
        ref_outs.append(o_t)
    ref_out_seq = jnp.stack(ref_outs, axis=0)
    assert jnp.allclose(out_seq, ref_out_seq, atol=1e-4, rtol=1e-4)
    assert jnp.allclose(h_seq, h_ref, atol=1e-4, rtol=1e-4)

    print("KERNEL_OK")
</pallas_src>

<mosaic_0001>
module attributes {stable_mosaic.version = 11 : i64} {
  func.func @_rnn_seq_kernel(%arg0: memref<1x8x128xf32, #tpu.memory_space<vmem>>, %arg1: memref<2x8x128xf32, #tpu.memory_space<vmem>>, %arg2: memref<256x128xf32, #tpu.memory_space<vmem>>, %arg3: memref<1x128xf32, #tpu.memory_space<vmem>>, %arg4: memref<256x128xf32, #tpu.memory_space<vmem>>, %arg5: memref<1x128xf32, #tpu.memory_space<vmem>>, %arg6: memref<128x128xf32, #tpu.memory_space<vmem>>, %arg7: memref<1x128xf32, #tpu.memory_space<vmem>>, %arg8: memref<1x8x128xf32, #tpu.memory_space<vmem>>, %arg9: memref<2x8x128xf32, #tpu.memory_space<vmem>>) attributes {dimension_semantics = [], scalar_prefetch = 0 : i64, scratch_operands = 0 : i64, tpu.core_type = #tpu.core_type<tc>} {
    %c0 = arith.constant 0 : index
    %c0_0 = arith.constant 0 : index
    %0 = vector.load %arg2[%c0, %c0_0] : memref<256x128xf32, #tpu.memory_space<vmem>>, vector<256x128xf32>
    %c0_1 = arith.constant 0 : index
    %c0_2 = arith.constant 0 : index
    %1 = vector.load %arg4[%c0_1, %c0_2] : memref<256x128xf32, #tpu.memory_space<vmem>>, vector<256x128xf32>
    %c0_3 = arith.constant 0 : index
    %c0_4 = arith.constant 0 : index
    %2 = vector.load %arg3[%c0_3, %c0_4] : memref<1x128xf32, #tpu.memory_space<vmem>>, vector<1x128xf32>
    %c0_5 = arith.constant 0 : index
    %c0_6 = arith.constant 0 : index
    %3 = vector.load %arg5[%c0_5, %c0_6] : memref<1x128xf32, #tpu.memory_space<vmem>>, vector<1x128xf32>
    %c0_7 = arith.constant 0 : index
    %c0_8 = arith.constant 0 : index
    %4 = vector.load %arg6[%c0_7, %c0_8] : memref<128x128xf32, #tpu.memory_space<vmem>>, vector<128x128xf32>
    %c0_9 = arith.constant 0 : index
    %c0_10 = arith.constant 0 : index
    %5 = vector.load %arg7[%c0_9, %c0_10] : memref<1x128xf32, #tpu.memory_space<vmem>>, vector<1x128xf32>
    %c0_11 = arith.constant 0 : index
    %c0_12 = arith.constant 0 : index
    %c0_13 = arith.constant 0 : index
    %6 = vector.load %arg1[%c0_11, %c0_12, %c0_13] : memref<2x8x128xf32, #tpu.memory_space<vmem>>, vector<1x8x128xf32>
    %7 = vector.shape_cast %6 : vector<1x8x128xf32> to vector<8x128xf32>
    %c1 = arith.constant 1 : index
    %c0_14 = arith.constant 0 : index
    %c0_15 = arith.constant 0 : index
    %8 = vector.load %arg1[%c1, %c0_14, %c0_15] : memref<2x8x128xf32, #tpu.memory_space<vmem>>, vector<1x8x128xf32>
    %9 = vector.shape_cast %8 : vector<1x8x128xf32> to vector<8x128xf32>
    %c0_16 = arith.constant 0 : index
    %c0_17 = arith.constant 0 : index
    %c0_18 = arith.constant 0 : index
    %10 = vector.load %arg0[%c0_16, %c0_17, %c0_18] : memref<1x8x128xf32, #tpu.memory_space<vmem>>, vector<1x8x128xf32>
    %11 = vector.shape_cast %10 : vector<1x8x128xf32> to vector<8x128xf32>
    %12 = tpu.concatenate %11, %7 in 1 : vector<8x128xf32>, vector<8x128xf32> -> vector<8x256xf32>
    %cst = arith.constant dense<0.000000e+00> : vector<8x128xf32>
    %13 = tpu.matmul %12, %0, %cst {dimension_numbers = #tpu.dot_dimension_numbers<[1], [0], [0], [1], [0, 0, 1, 1], [], []>} : vector<8x256xf32>, vector<256x128xf32>, vector<8x128xf32> -> vector<8x128xf32>
    %14 = vector.broadcast %2 : vector<1x128xf32> to vector<8x128xf32>
    %15 = arith.addf %13, %14 : vector<8x128xf32>
    %16 = math.tanh %15 : vector<8x128xf32>
    %17 = tpu.concatenate %16, %9 in 1 : vector<8x128xf32>, vector<8x128xf32> -> vector<8x256xf32>
    %cst_19 = arith.constant dense<0.000000e+00> : vector<8x128xf32>
    %18 = tpu.matmul %17, %1, %cst_19 {dimension_numbers = #tpu.dot_dimension_numbers<[1], [0], [0], [1], [0, 0, 1, 1], [], []>} : vector<8x256xf32>, vector<256x128xf32>, vector<8x128xf32> -> vector<8x128xf32>
    %19 = vector.broadcast %3 : vector<1x128xf32> to vector<8x128xf32>
    %20 = arith.addf %18, %19 : vector<8x128xf32>
    %21 = math.tanh %20 : vector<8x128xf32>
    %cst_20 = arith.constant dense<0.000000e+00> : vector<8x128xf32>
    %22 = tpu.matmul %21, %4, %cst_20 {dimension_numbers = #tpu.dot_dimension_numbers<[1], [0], [0], [1], [0, 0, 1, 1], [], []>} : vector<8x128xf32>, vector<128x128xf32>, vector<8x128xf32> -> vector<8x128xf32>
    %23 = vector.broadcast %5 : vector<1x128xf32> to vector<8x128xf32>
    %24 = arith.addf %22, %23 : vector<8x128xf32>
    %cst_21 = arith.constant dense<0xFF800000> : vector<8xf32>
    %25 = vector.multi_reduction <maximumf>, %24, %cst_21 [1] : vector<8x128xf32> to vector<8xf32>
    %26 = vector.shape_cast %25 : vector<8xf32> to vector<8x1xf32>
    %27 = vector.broadcast %26 : vector<8x1xf32> to vector<8x128xf32>
    %28 = arith.subf %24, %27 : vector<8x128xf32>
    %29 = math.exp %28 : vector<8x128xf32>
    %cst_22 = arith.constant dense<0.000000e+00> : vector<8xf32>
    %30 = vector.multi_reduction <add>, %29, %cst_22 [1] : vector<8x128xf32> to vector<8xf32>
    %31 = vector.shape_cast %30 : vector<8xf32> to vector<8x1xf32>
    %32 = math.log %31 : vector<8x1xf32>
    %33 = vector.broadcast %32 : vector<8x1xf32> to vector<8x128xf32>
    %34 = arith.subf %28, %33 : vector<8x128xf32>
    %c0_23 = arith.constant 0 : index
    %c0_24 = arith.constant 0 : index
    %c0_25 = arith.constant 0 : index
    %35 = vector.load %arg8[%c0_23, %c0_24, %c0_25] : memref<1x8x128xf32, #tpu.memory_space<vmem>>, vector<1x8x128xf32>
    %36 = vector.shape_cast %35 : vector<1x8x128xf32> to vector<8x128xf32>
    %37 = vector.shape_cast %34 : vector<8x128xf32> to vector<1x8x128xf32>
    tpu.vector_store %arg8[%c0_23, %c0_24, %c0_25], %37 {strides = array<i32>} : memref<1x8x128xf32, #tpu.memory_space<vmem>>, vector<1x8x128xf32>,
    %c0_26 = arith.constant 0 : index
    %c0_27 = arith.constant 0 : index
    %c0_28 = arith.constant 0 : index
    %38 = vector.load %arg9[%c0_26, %c0_27, %c0_28] : memref<2x8x128xf32, #tpu.memory_space<vmem>>, vector<1x8x128xf32>
    %39 = vector.shape_cast %38 : vector<1x8x128xf32> to vector<8x128xf32>
    %40 = vector.shape_cast %16 : vector<8x128xf32> to vector<1x8x128xf32>
    tpu.vector_store %arg9[%c0_26, %c0_27, %c0_28], %40 {strides = array<i32>} : memref<2x8x128xf32, #tpu.memory_space<vmem>>, vector<1x8x128xf32>,
    %c1_29 = arith.constant 1 : index
    %c0_30 = arith.constant 0 : index
    %c0_31 = arith.constant 0 : index
    %41 = vector.load %arg9[%c1_29, %c0_30, %c0_31] : memref<2x8x128xf32, #tpu.memory_space<vmem>>, vector<1x8x128xf32>
    %42 = vector.shape_cast %41 : vector<1x8x128xf32> to vector<8x128xf32>
    %43 = vector.shape_cast %21 : vector<8x128xf32> to vector<1x8x128xf32>
    tpu.vector_store %arg9[%c1_29, %c0_30, %c0_31], %43 {strides = array<i32>} : memref<2x8x128xf32, #tpu.memory_space<vmem>>, vector<1x8x128xf32>,
    return
  }
}

</mosaic_0001>

<bundles_post_ra>
// kernel: tpu_custom_call.1
= control target key start
LH: loop header
LB: loop body
LE: loop exit
PB: predicated region body
PF: predicated region fallthrough
CT: control target
= control target key end

     0   :  { %15 = vsyncpa [#allocation3], 0  ;;  %s660_s0 = inlined_call_operand.hbm [shape: f32[1,8,128], index: 0, kind: input, shape index: {}]   ;;  %s661_s1 = inlined_call_operand.hbm [shape: f32[2,8,128], index: 1, kind: input, shape index: {}]   ;;  %s662_s2 = inlined_call_operand.hbm [shape: f32[256,128], index: 2, kind: input, shape index: {}]   ;;  %s663_s3 = inlined_call_operand.vmem [shape: f32[1,128], index: 3, kind: input, shape index: {}]   ;;  %s664_s4 = inlined_call_operand.hbm [shape: f32[256,128], index: 4, kind: input, shape index: {}]   ;;  %s665_s5 = inlined_call_operand.vmem [shape: f32[1,128], index: 5, kind: input, shape index: {}]   ;;  %s666_s6 = inlined_call_operand.hbm [shape: f32[128,128], index: 6, kind: input, shape index: {}]   ;;  %s667_s7 = inlined_call_operand.vmem [shape: f32[1,128], index: 7, kind: input, shape index: {}]   ;;  %s668_s8 = inlined_call_operand.hbm [shape: f32[1,8,128], index: 8, kind: output, shape index: {0}]   ;;  %s669_s9 = inlined_call_operand.hbm [shape: f32[2,8,128], index: 9, kind: output, shape index: {1}]  }
   0x1   :  { %16 = vsyncpa [#allocation6], 0 }
   0x2   :  { %17 = vsyncpa [#allocation9], 0 }
   0x3   :  { %18 = vsyncpa [#allocation4], 0  ;;  %s35_s11 = sshll.u32 %s661_s1, 4  ;;  %s36_s11 = int_to_ptr.hbm [resolvable:$true] %s35_s11 }
   0x4   :  { %19 = vsyncpa [#allocation13], 0  ;;  %s556_s12 = smov [#allocation5]   ;;  %s63_s16 = sshll.u32 %s664_s4, 4  ;;  %s64_s16 = int_to_ptr.hbm [resolvable:$true] %s63_s16 }
   0x5   :  { %s37_s13 = sshll.u32 %s556_s12, 4  ;;  %s557_s17 = smov 128   ;;  %s38_s13 = int_to_ptr.vmem [resolvable:$true] %s37_s13 }
   0x6   :  { %s558_s18 = smov 8   ;;  %s559_s19 = smov [#allocation8]  }
   0x7   :  { %43 = dma.hbm_to_vmem [thread:$0]  %s36_s11, 256, %s38_s13, [#allocation6], %s557_s17, %s557_s17, %s558_s18  }
   0x8   :  { %s65_s20 = sshll.u32 %s559_s19, 4  ;;  %s25_s22 = sshll.u32 %s660_s0, 4  ;;  %s66_s20 = int_to_ptr.vmem [resolvable:$true] %s65_s20  ;;  %s26_s22 = int_to_ptr.hbm [resolvable:$true] %s25_s22 }
   0x9   :  { %71 = dma.hbm_to_vmem [thread:$0]  %s64_s16, 4096, %s66_s20, [#allocation9], %s557_s17, %s557_s17, %s558_s18  }
   0xa   :  { %s48_s24 = sshll.u32 %s662_s2, 4  ;;  %s560_s25 = smov [#allocation2]   ;;  %s49_s24 = int_to_ptr.hbm [resolvable:$true] %s48_s24 }
   0xb   :  { %s27_s26 = sshll.u32 %s560_s25, 4  ;;  %s561_s27 = smov [#allocation7]   ;;  %s28_s26 = int_to_ptr.vmem [resolvable:$true] %s27_s26 }
   0xc   :  { %30 = dma.hbm_to_vmem [thread:$0]  %s26_s22, 128, %s28_s26, [#allocation3]  }
   0xd   :  { %s50_s28 = sshll.u32 %s561_s27, 4  ;;  %s78_s0 = sshll.u32 %s666_s6, 4  ;;  %s51_s28 = int_to_ptr.vmem [resolvable:$true] %s50_s28  ;;  %s79_s0 = int_to_ptr.hbm [resolvable:$true] %s78_s0 }
   0xe   :  { %56 = dma.hbm_to_vmem [thread:$0]  %s49_s24, 4096, %s51_s28, [#allocation6], %s557_s17, %s557_s17, %s558_s18  }
   0xf   :  { %s562_s10 = smov [#allocation10]  }
  0x10   :  { %s80_s11 = sshll.u32 %s562_s10, 4  ;;  %s81_s11 = int_to_ptr.vmem [resolvable:$true] %s80_s11 }
  0x11   :  { %86 = dma.hbm_to_vmem [thread:$0]  %s79_s0, 2048, %s81_s11, [#allocation9], %s557_s17, %s557_s17, %s558_s18  }
  0x12   :  { %546 = dma.done.wait [#allocation3], 128  }
  0x13   :  { %547 = vsyncadd [#allocation3], 4294967168 }
  0x14   :  { %548 = dma.done.wait [#allocation6], 4352  }
  0x15   :  { %549 = vsyncadd [#allocation6], 4294962944 }
  0x16   :  { %550 = dma.done.wait [#allocation9], 6144  }
  0x17   :  { %551 = vsyncadd [#allocation9], 4294961152  ;;  %v124_v0 = vld [vmem:[#allocation7 + $0x78] sm:$0xff]  ;;  %v123_v1 = vld [vmem:[#allocation7 + $0x70] sm:$0xff]  ;;  %s338_s20 = sshll.u32 %s669_s9, 4  ;;  %s328_s4 = sshll.u32 %s668_s8, 4  ;;  %s339_s20 = int_to_ptr.hbm [resolvable:$true] %s338_s20  ;;  %s329_s4 = int_to_ptr.hbm [resolvable:$true] %s328_s4 }
  0x18   :  { %v140_v2 = vld [vmem:[#allocation7 + $0xf8] sm:$0xff]  ;;  %199 = vmatpush.msra.mxu0 %v124_v0  ;;  %v139_v3 = vld [vmem:[#allocation7 + $0xf0] sm:$0xff]  ;;  %v122_v4 = vld [vmem:[#allocation7 + $0x68] sm:$0xff] }
  0x19   :  { %219 = vmatpush.msra.mxu1 %v140_v2  ;;  %v138_v5 = vld [vmem:[#allocation7 + $0xe8] sm:$0xff]  ;;  %v121_v6 = vld [vmem:[#allocation7 + $0x60] sm:$0xff]  ;;  %v120_v8 = vld [vmem:[#allocation7 + $0x58] sm:$0xff] }
  0x1a   :  { %200 = vmatpush.msra.mxu0 %v123_v1  ;;  %v137_v7 = vld [vmem:[#allocation7 + $0xe0] sm:$0xff]  ;;  %v136_v9 = vld [vmem:[#allocation7 + $0xd8] sm:$0xff]  ;;  %v119_v10 = vld [vmem:[#allocation7 + $0x50] sm:$0xff] }
  0x1b   :  { %220 = vmatpush.msra.mxu1 %v139_v3  ;;  %v135_v11 = vld [vmem:[#allocation7 + $0xd0] sm:$0xff]  ;;  %v118_v12 = vld [vmem:[#allocation7 + $0x48] sm:$0xff]  ;;  %v156_v14 = vld [vmem:[#allocation8 + $0x78] sm:$0xff] }
  0x1c   :  { %201 = vmatpush.msra.mxu0 %v122_v4  ;;  %v134_v13 = vld [vmem:[#allocation7 + $0xc8] sm:$0xff]  ;;  %v155_v15 = vld [vmem:[#allocation8 + $0x70] sm:$0xff]  ;;  %v117_v16 = vld [vmem:[#allocation7 + $0x40] sm:$0xff]  ;;  %243 = vmatpush.msra.mxu2 %v156_v14 }
  0x1d   :  { %221 = vmatpush.msra.mxu1 %v138_v5  ;;  %v133_v17 = vld [vmem:[#allocation7 + $0xc0] sm:$0xff]  ;;  %v172_v18 = vld [vmem:[#allocation8 + $0xf8] sm:$0xff]  ;;  %v154_v19 = vld [vmem:[#allocation8 + $0x68] sm:$0xff] }
  0x1e   :  { %202 = vmatpush.msra.mxu0 %v121_v6  ;;  %v171_v20 = vld [vmem:[#allocation8 + $0xf0] sm:$0xff]  ;;  %v116_v21 = vld [vmem:[#allocation7 + $0x38] sm:$0xff]  ;;  %244 = vmatpush.msra.mxu2 %v155_v15  ;;  %v153_v23 = vld [vmem:[#allocation8 + $0x60] sm:$0xff] }
  0x1f   :  { %222 = vmatpush.msra.mxu1 %v137_v7  ;;  %v132_v22 = vld [vmem:[#allocation7 + $0xb8] sm:$0xff]  ;;  %263 = vmatpush.msra.mxu3 %v172_v18  ;;  %v170_v24 = vld [vmem:[#allocation8 + $0xe8] sm:$0xff]  ;;  %v115_v25 = vld [vmem:[#allocation7 + $0x30] sm:$0xff] }
  0x20   :  { %203 = vmatpush.msra.mxu0 %v120_v8  ;;  %v114_v26 = vld [vmem:[#allocation7 + $0x28] sm:$0xff]  ;;  %v131_v27 = vld [vmem:[#allocation7 + $0xb0] sm:$0xff]  ;;  %245 = vmatpush.msra.mxu2 %v154_v19  ;;  %v152_v28 = vld [vmem:[#allocation8 + $0x58] sm:$0xff] }
  0x21   :  { %223 = vmatpush.msra.mxu1 %v136_v9  ;;  %264 = vmatpush.msra.mxu3 %v171_v20  ;;  %v169_v29 = vld [vmem:[#allocation8 + $0xe0] sm:$0xff]  ;;  %v130_v30 = vld [vmem:[#allocation7 + $0xa8] sm:$0xff]  ;;  %v151_v31 = vld [vmem:[#allocation8 + $0x50] sm:$0xff] }
  0x22   :  { %204 = vmatpush.msra.mxu0 %v119_v10  ;;  %246 = vmatpush.msra.mxu2 %v153_v23  ;;  %v168_v32 = vld [vmem:[#allocation8 + $0xd8] sm:$0xff]  ;;  %v113_v33 = vld [vmem:[#allocation7 + $0x20] sm:$0xff]  ;;  %v150_v35 = vld [vmem:[#allocation8 + $0x48] sm:$0xff] }
  0x23   :  { %224 = vmatpush.msra.mxu1 %v135_v11  ;;  %265 = vmatpush.msra.mxu3 %v170_v24  ;;  %v129_v34 = vld [vmem:[#allocation7 + $0xa0] sm:$0xff]  ;;  %v167_v36 = vld [vmem:[#allocation8 + $0xd0] sm:$0xff]  ;;  %v112_v37 = vld [vmem:[#allocation7 + $0x18] sm:$0xff] }
  0x24   :  { %205 = vmatpush.msra.mxu0 %v118_v12  ;;  %247 = vmatpush.msra.mxu2 %v152_v28  ;;  %v128_v38 = vld [vmem:[#allocation7 + $0x98] sm:$0xff]  ;;  %v149_v39 = vld [vmem:[#allocation8 + $0x40] sm:$0xff]  ;;  %v166_v40 = vld [vmem:[#allocation8 + $0xc8] sm:$0xff] }
  0x25   :  { %225 = vmatpush.msra.mxu1 %v134_v13  ;;  %266 = vmatpush.msra.mxu3 %v169_v29  ;;  %v111_v41 = vld [vmem:[#allocation7 + $0x10] sm:$0xff]  ;;  %v148_v43 = vld [vmem:[#allocation8 + $0x38] sm:$0xff]  ;;  %v165_v44 = vld [vmem:[#allocation8 + $0xc0] sm:$0xff] }
  0x26   :  { %206 = vmatpush.msra.mxu0 %v117_v16  ;;  %248 = vmatpush.msra.mxu2 %v151_v31  ;;  %v127_v42 = vld [vmem:[#allocation7 + $0x90] sm:$0xff]  ;;  %v110_v45 = vld [vmem:[#allocation7 + $0x8] sm:$0xff]  ;;  %v164_v48 = vld [vmem:[#allocation8 + $0xb8] sm:$0xff] }
  0x27   :  { %226 = vmatpush.msra.mxu1 %v133_v17  ;;  %267 = vmatpush.msra.mxu3 %v168_v32  ;;  %v126_v46 = vld [vmem:[#allocation7 + $0x88] sm:$0xff]  ;;  %v147_v47 = vld [vmem:[#allocation8 + $0x30] sm:$0xff]  ;;  %v109_v49 = vld [vmem:[#allocation7] sm:$0xff] }
  0x28   :  { %207 = vmatpush.msra.mxu0 %v116_v21  ;;  %249 = vmatpush.msra.mxu2 %v150_v35  ;;  %v125_v50 = vld [vmem:[#allocation7 + $0x80] sm:$0xff]  ;;  %v195_v51 = vld [vmem:[#allocation2] sm:$0xff]  ;;  %v192_v52 = vld [vmem:[#allocation5] sm:$0xff] }
  0x29   :  { %227 = vmatpush.msra.mxu1 %v132_v22  ;;  %268 = vmatpush.msra.mxu3 %v167_v36  ;;  %v146_v53 = vld [vmem:[#allocation8 + $0x28] sm:$0xff]  ;;  %v163_v54 = vld [vmem:[#allocation8 + $0xb0] sm:$0xff]  ;;  %v145_v55 = vld [vmem:[#allocation8 + $0x20] sm:$0xff] }
  0x2a   :  { %208 = vmatpush.msra.mxu0 %v115_v25  ;;  %250 = vmatpush.msra.mxu2 %v149_v39  ;;  %v162_v56 = vld [vmem:[#allocation8 + $0xa8] sm:$0xff]  ;;  %v144_v57 = vld [vmem:[#allocation8 + $0x18] sm:$0xff]  ;;  %v161_v58 = vld [vmem:[#allocation8 + $0xa0] sm:$0xff] }
  0x2b   :  { %228 = vmatpush.msra.mxu1 %v131_v27  ;;  %269 = vmatpush.msra.mxu3 %v166_v40  ;;  %v143_v59 = vld [vmem:[#allocation8 + $0x10] sm:$0xff]  ;;  %v160_v60 = vld [vmem:[#allocation8 + $0x98] sm:$0xff]  ;;  %v142_v61 = vld [vmem:[#allocation8 + $0x8] sm:$0xff] }
  0x2c   :  { %209 = vmatpush.msra.mxu0 %v114_v26  ;;  %251 = vmatpush.msra.mxu2 %v148_v43  ;;  %v159_v62 = vld [vmem:[#allocation8 + $0x90] sm:$0xff]  ;;  %v141_v63 = vld [vmem:[#allocation8] sm:$0xff]  ;;  %v158_v0 = vld [vmem:[#allocation8 + $0x88] sm:$0xff] }
  0x2d   :  { %229 = vmatpush.msra.mxu1 %v130_v30  ;;  %270 = vmatpush.msra.mxu3 %v165_v44  ;;  %v157_v1 = vld [vmem:[#allocation8 + $0x80] sm:$0xff]  ;;  %v194_v2 = vld [vmem:[#allocation5 + $0x8] sm:$0xff]  ;;  %v189_v4 = vld [vmem:[#allocation10 + $0x70] sm:$0xff] }
  0x2e   :  { %210 = vmatpush.msra.mxu0 %v113_v33  ;;  %252 = vmatpush.msra.mxu2 %v147_v47  ;;  %v190_v3 = vld [vmem:[#allocation10 + $0x78] sm:$0xff]  ;;  %v188_v5 = vld [vmem:[#allocation10 + $0x68] sm:$0xff]  ;;  %v187_v6 = vld [vmem:[#allocation10 + $0x60] sm:$0xff] }
  0x2f   :  { %230 = vmatpush.msra.mxu1 %v129_v34  ;;  %271 = vmatpush.msra.mxu3 %v164_v48  ;;  %v186_v7 = vld [vmem:[#allocation10 + $0x58] sm:$0xff]  ;;  %v185_v8 = vld [vmem:[#allocation10 + $0x50] sm:$0xff]  ;;  %v184_v9 = vld [vmem:[#allocation10 + $0x48] sm:$0xff] }
  0x30   :  { %211 = vmatpush.msra.mxu0 %v112_v37  ;;  %253 = vmatpush.msra.mxu2 %v146_v53  ;;  %v183_v10 = vld [vmem:[#allocation10 + $0x40] sm:$0xff]  ;;  %v182_v11 = vld [vmem:[#allocation10 + $0x38] sm:$0xff]  ;;  %v181_v12 = vld [vmem:[#allocation10 + $0x30] sm:$0xff] }
  0x31   :  { %231 = vmatpush.msra.mxu1 %v128_v38  ;;  %272 = vmatpush.msra.mxu3 %v163_v54  ;;  %v367_v13 = vld [vmem:[%s663_s3] ss:$0 sm:$0xff]  ;;  %v179_v20 = vld [vmem:[#allocation10 + $0x20] sm:$0xff]  ;;  %v178_v21 = vld [vmem:[#allocation10 + $0x18] sm:$0xff] }
  0x32   :  { %212 = vmatpush.msra.mxu0 %v111_v41  ;;  %254 = vmatpush.msra.mxu2 %v145_v55  ;;  %v180_v19 = vld [vmem:[#allocation10 + $0x28] sm:$0xff]  ;;  %v177_v22 = vld [vmem:[#allocation10 + $0x10] sm:$0xff]  ;;  %v175_v24 = vld [vmem:[#allocation10] sm:$0xff] }
  0x33   :  { %232 = vmatpush.msra.mxu1 %v127_v42  ;;  %273 = vmatpush.msra.mxu3 %v162_v56  ;;  %v176_v23 = vld [vmem:[#allocation10 + $0x8] sm:$0xff] }
  0x34   :  { %213 = vmatpush.msra.mxu0 %v110_v45  ;;  %255 = vmatpush.msra.mxu2 %v144_v57  ;;  %v368_v25 = vld [vmem:[%s665_s5] ss:$0 sm:$0xff]  ;;  %s563_s5 = smov [#allocation12]  }
  0x35   :  { %233 = vmatpush.msra.mxu1 %v126_v46  ;;  %274 = vmatpush.msra.mxu3 %v161_v58  ;;  %v369_v31 = vld [vmem:[%s667_s7] ss:$0 sm:$0xff]  ;;  %s336_s15 = sshll.u32 %s563_s5, 4  ;;  %s564_s7 = smov [#allocation11]   ;;  %s337_s15 = int_to_ptr.vmem [resolvable:$true] %s336_s15 }
  0x36   :  { %214 = vmatpush.msra.mxu0 %v109_v49  ;;  %256 = vmatpush.msra.mxu2 %v143_v59  ;;  %s326_s21 = sshll.u32 %s564_s7, 4  ;;  %s327_s21 = int_to_ptr.vmem [resolvable:$true] %s326_s21 }
  0x37   :  { %234 = vmatpush.msra.mxu1 %v125_v50  ;;  %215 = vmatmul.f32.vlgmr.msra.gmra.mxu0 %v195_v51 }
  0x38   :  { %235 = vmatmul.f32.vlgmr.msra.gmra.mxu1 %v192_v52  ;;  %275 = vmatpush.msra.mxu3 %v160_v60 }
  0x39   :  { %257 = vmatpush.msra.mxu2 %v142_v61  ;;  %287 = vmatpush.msrb.mxu0 %v190_v3 }
  0x3a   :  { %276 = vmatpush.msra.mxu3 %v159_v62 }
  0x3b   :  { %258 = vmatpush.msra.mxu2 %v141_v63  ;;  %288 = vmatpush.msrb.mxu0 %v189_v4 }
  0x3c   :  { %277 = vmatpush.msra.mxu3 %v158_v0 }
  0x3d   :  { %289 = vmatpush.msrb.mxu0 %v188_v5 }
  0x3e   :  { %278 = vmatpush.msra.mxu3 %v157_v1 }
  0x3f   :  { %279 = vmatmul.f32.vlgmr.msra.gmra.mxu3 %v194_v2  ;;  %290 = vmatpush.msrb.mxu0 %v187_v6 }
  0x41   :  { %291 = vmatpush.msrb.mxu0 %v186_v7 }
  0x43   :  { %292 = vmatpush.msrb.mxu0 %v185_v8 }
  0x45   :  { %293 = vmatpush.msrb.mxu0 %v184_v9 }
  0x47   :  { %294 = vmatpush.msrb.mxu0 %v183_v10 }
  0x49   :  { %295 = vmatpush.msrb.mxu0 %v182_v11 }
  0x4b   :  { %296 = vmatpush.msrb.mxu0 %v181_v12 }
  0x4d   :  { %297 = vmatpush.msrb.mxu0 %v180_v19 }
  0x4f   :  { %298 = vmatpush.msrb.mxu0 %v179_v20 }
  0x51   :  { %299 = vmatpush.msrb.mxu0 %v178_v21 }
  0x53   :  { %300 = vmatpush.msrb.mxu0 %v177_v22 }
  0x55   :  { %301 = vmatpush.msrb.mxu0 %v176_v23 }
  0x57   :  { %302 = vmatpush.msrb.mxu0 %v175_v24 }
  0xb4   :  { %v216_v14 = vpop.f32.mrf.mxu0 }
  0xb5   :  { %v236_v15 = vpop.f32.mrf.mxu1  ;;  %v217_v16 = vadd.f32 %v367_v13, %v216_v14 }
  0xb7   :  { %v237_v17 = vadd.f32 %v236_v15, %v217_v16 }
  0xb9   :  { %370 = vtanh.f32 %v237_v17 }
  0xbf   :  { %v371_v18 = vpop.eup %370 }
  0xc0   :  { %318 = vst [vmem:[#allocation12] sm:$0xff] %v371_v18  ;;  %259 = vmatmul.f32.vlgmr.msra.gmra.mxu2 %v371_v18 }
  0xc2   :  { %v280_v27 = vpop.f32.mrf.mxu3 }
 0x143   :  { %v260_v26 = vpop.f32.mrf.mxu2 }
 0x144   :  { %v261_v28 = vadd.f32 %v368_v25, %v260_v26 }
 0x146   :  { %v281_v29 = vadd.f32 %v280_v27, %v261_v28 }
 0x148   :  { %372 = vtanh.f32 %v281_v29 }
 0x14e   :  { %v373_v30 = vpop.eup %372 }
 0x14f   :  { %320 = vst [vmem:[#allocation12 + $0x8] sm:$0xff] %v373_v30  ;;  %303 = vmatmul.f32.vlgmr.msrb.gmra.mxu0 %v373_v30 }
 0x150   :  { %344 = dma.vmem_to_hbm [thread:$0]  %s337_s15, 256, %s339_s20, [#allocation13], %s557_s17, %s557_s17, %s558_s18  }
 0x1cc   :  { %v304_v32 = vpop.f32.mrf.mxu0 }
 0x1cd   :  { %v305_v33 = vadd.f32 %v369_v31, %v304_v32 }
 0x1cf   :  { %307 = vmax.xlane.f32.xlu0 %v305_v33 }
 0x242   :  { %v308_v34 = vpop.xlane.xlu0 %307 }
 0x243   :  { %v309_v35 = vsub.f32 %v305_v33, %v308_v34 }
 0x245   :  { %v310_v36 = vmul.f32 1.442695, %v309_v35 }
 0x247   :  { %374 = vpow2.f32 %v310_v36 }
 0x24d   :  { %v375_v37 = vpop.eup %374 }
 0x24e   :  { %312 = vadd.xlane.f32.xlu0 %v375_v37 }
 0x2c1   :  { %v313_v38 = vpop.xlane.xlu0 %312 }
 0x2c2   :  { %376 = vlog2.f32 %v313_v38 }
 0x2c8   :  { %v377_v39 = vpop.eup %376 }
 0x2c9   :  { %v315_v40 = vmul.f32 0.6931472, %v377_v39 }
 0x2cb   :  { %v316_v41 = vsub.f32 %v309_v35, %v315_v40 }
 0x2cd   :  { %317 = vst [vmem:[#allocation11] sm:$0xff] %v316_v41 }
 0x2ce   :  { %331 = dma.vmem_to_hbm [thread:$0]  %s327_s21, 128, %s329_s4, [#allocation4]  }
 0x2cf   :  { %552 = dma.done.wait [#allocation4], 128  }
 0x2d0   :  { %553 = vsyncadd [#allocation4], 4294967168 }
 0x2d1   :  { %554 = dma.done.wait [#allocation13], 256  }
 0x2d2   :  { %555 = vsyncadd [#allocation13], 4294967040 }
 0x2d3   :  { %353 = vsyncpa [#allocation3], 1 }
 0x2d4   :  { %354 = vsyncpa [#allocation6], 1 }
 0x2d5   :  { %355 = vsyncpa [#allocation9], 1 }
 0x2d6   :  { %356 = vsyncpa [#allocation4], 1 }
 0x2d7   :  { %357 = vsyncpa [#allocation13], 1 }

</bundles_post_ra>
